<compile_context>
chip_gen: v7x
topology: tpu7x:2x2x1
jax: 0.10.0
libtpu: 0.0.40
codegen_flags: <defaults>
</compile_context>

<pallas_src>
import functools

import jax
import jax.numpy as jnp
from jax.experimental import pallas as pl
from jax.experimental.pallas import tpu as pltpu


OUT_LANES = 128  # lane-dense output slab; q1 -> lane 0, q2 -> lane 1.


# ---------------------------------------------------------------------------
# Kernels
# ---------------------------------------------------------------------------
def _critic_fused_kernel(hidden,
                         sa_ref,
                         w1_ref, b1_ref,
                         w2_ref, b2_ref,
                         w5_ref, b5_ref,
                         w3_ref, w6_ref, b36_ref,
                         q_ref):
    """Single-block path: both Q branches in one invocation (v5e/v6e)."""
    f32 = jnp.float32
    wd = w1_ref.dtype                       # weights used at stored dtype

    # Fused layer 1 of both branches: sa @ [in_dim, 2H].
    sa = sa_ref[...].astype(wd)             # tiny (B, in_dim) cast (no-op if fp32)
    h = jnp.dot(sa, w1_ref[...], preferred_element_type=f32) + b1_ref[...]
    h = jnp.maximum(h, 0.0)                 # (B, 2H) fp32
    h1 = h[:, :hidden]
    h2 = h[:, hidden:]

    # Layer 2 of each branch (independent 256x256 MXU dots, fp32 accumulate).
    g1 = jnp.maximum(
        jnp.dot(h1.astype(wd), w2_ref[...], preferred_element_type=f32)
        + b2_ref[...], 0.0)
    g2 = jnp.maximum(
        jnp.dot(h2.astype(wd), w5_ref[...], preferred_element_type=f32)
        + b5_ref[...], 0.0)

    # Output layer: per-branch multiply + lane reduction (replaces the old
    # 99%-zero block-diagonal [2H, 128] MXU dot).
    q1 = jnp.sum(g1 * w3_ref[...], axis=-1, keepdims=True) + b36_ref[:, 0:1]
    q2 = jnp.sum(g2 * w6_ref[...], axis=-1, keepdims=True) + b36_ref[:, 1:2]

    lane = jax.lax.broadcasted_iota(jnp.int32, q_ref.shape, 1)
    q_ref[...] = jnp.where(lane == 0, q1,
                           jnp.where(lane == 1, q2, 0.0)).astype(q_ref.dtype)


def _critic_split_kernel(sa_ref,
                         w1_ref, b1_ref,
                         w2_ref, b2_ref,
                         wo_ref, bo_ref,
                         q_ref):
    """grid=(2,) path: program g computes Q-branch g (one per TensorCore on v7x)."""
    f32 = jnp.float32
    wd = w1_ref.dtype

    sa = sa_ref[...].astype(wd)
    h = jnp.maximum(
        jnp.dot(sa, w1_ref[...], preferred_element_type=f32) + b1_ref[...], 0.0)
    g = jnp.maximum(
        jnp.dot(h.astype(wd), w2_ref[...], preferred_element_type=f32)
        + b2_ref[...], 0.0)
    q = jnp.sum(g * wo_ref[...], axis=-1, keepdims=True) + bo_ref[...]

    lane = jax.lax.broadcasted_iota(jnp.int32, q_ref.shape, 1)
    q_ref[...] = jnp.where(lane == 0, q, 0.0).astype(q_ref.dtype)


# ---------------------------------------------------------------------------
# One-time parameter preparation (transpose / fuse / narrow-cast).
# ---------------------------------------------------------------------------
def prepare_params(params, hidden=256, weight_dtype=jnp.bfloat16):
    """Prepare weights once; reuse every step.

    PyTorch nn.Linear stores W as [out, in]; everything here becomes [in, out].
    Matmul weights are stored at `weight_dtype` (bf16 default: halves HBM->VMEM
    DMA, the binding resource); biases and the 256-long output vectors stay fp32.
    Both the fused (single-block) and branch-stacked (v7x 2-TensorCore) layouts
    are produced — total < 1 MB, only the layout actually passed gets DMA'd.
    """
    wd = weight_dtype
    f32 = jnp.float32
    w1, w4 = params["w1"].T, params["w4"].T          # (in_dim, H)
    w2, w5 = params["w2"].T, params["w5"].T          # (H, H)
    return {
        # --- fused single-block layout (v5e/v6e) ---
        "w1f": jnp.concatenate([w1, w4], axis=1).astype(wd),            # (in, 2H)
        "b1f": jnp.concatenate([params["b1"], params["b4"]]
                               ).reshape(1, 2 * hidden).astype(f32),
        "w2": w2.astype(wd),
        "b2": params["b2"].reshape(1, hidden).astype(f32),
        "w5": w5.astype(wd),
        "b5": params["b5"].reshape(1, hidden).astype(f32),
        "w3v": params["w3"].reshape(1, hidden).astype(f32),
        "w6v": params["w6"].reshape(1, hidden).astype(f32),
        "b36": jnp.stack([params["b3"][0], params["b6"][0]]
                         ).reshape(1, 2).astype(f32),
        # --- branch-stacked layout (v7x two-TensorCore split) ---
        "w1s": jnp.stack([w1, w4]).astype(wd),                          # (2, in, H)
        "b1s": jnp.stack([params["b1"], params["b4"]]
                         ).reshape(2, 1, hidden).astype(f32),
        "w2s": jnp.stack([w2, w5]).astype(wd),                          # (2, H, H)
        "b2s": jnp.stack([params["b2"], params["b5"]]
                         ).reshape(2, 1, hidden).astype(f32),
        "wos": jnp.stack([params["w3"], params["w6"]]
                         ).reshape(2, 1, hidden).astype(f32),
        "bos": jnp.stack([params["b3"], params["b6"]]
                         ).reshape(2, 1, 1).astype(f32),
    }


def _has_two_tensorcores():
    """Best-effort detection of v7x-style chips (2 TensorCores per chip)."""
    try:
        kind = jax.devices()[0].device_kind.lower()
    except Exception:
        return False
    return "v7" in kind


# ---------------------------------------------------------------------------
# Forward wrapper
# ---------------------------------------------------------------------------
def critic_forward(state, action, prep, hidden=256, split_branches=None):
    """Pallas implementation of Critic.forward(state, action) -> (q1, q2)."""
    if split_branches is None:
        split_branches = _has_two_tensorcores()

    B = state.shape[0]
    sa = jnp.concatenate([state, action], axis=1).astype(jnp.float32)
    in_dim = sa.shape[1]

    # FLOPs identical for both paths; output/reduction term is negligible.
    flops = 2 * B * (in_dim * 2 * hidden + 2 * hidden * hidden + 2 * hidden)
    vmem = pl.BlockSpec(memory_space=pltpu.MemorySpace.VMEM)

    if not split_branches:
        # --- single-block path: whole problem (< 0.5 MB) lives in VMEM ---
        args = (sa,
                prep["w1f"], prep["b1f"],
                prep["w2"], prep["b2"],
                prep["w5"], prep["b5"],
                prep["w3v"], prep["w6v"], prep["b36"])
        bytes_accessed = (sum(int(a.size) * a.dtype.itemsize for a in args)
                          + B * OUT_LANES * 4)
        q = pl.pallas_call(
            functools.partial(_critic_fused_kernel, hidden),
            out_shape=jax.ShapeDtypeStruct((B, OUT_LANES), jnp.float32),
            in_specs=[vmem] * len(args),
            out_specs=vmem,
            cost_estimate=pl.CostEstimate(
                flops=flops, transcendentals=0, bytes_accessed=bytes_accessed),
        )(*args)
        return q[:, 0:1], q[:, 1:2]

    # --- v7x path: one Q branch per program, sharded across the 2 TensorCores ---
    args = (sa,
            prep["w1s"], prep["b1s"],
            prep["w2s"], prep["b2s"],
            prep["wos"], prep["bos"])
    bytes_accessed = (sum(int(a.size) * a.dtype.itemsize for a in args)
                      + 2 * B * OUT_LANES * 4)

    def _branch_spec(arr):   # per-branch slice of a (2, a, b) stacked parameter
        return pl.BlockSpec((None,) + tuple(arr.shape[1:]), lambda g: (g, 0, 0))

    in_specs = [pl.BlockSpec((B, in_dim), lambda g: (0, 0)),
                _branch_spec(prep["w1s"]), _branch_spec(prep["b1s"]),
                _branch_spec(prep["w2s"]), _branch_spec(prep["b2s"]),
                _branch_spec(prep["wos"]), _branch_spec(prep["bos"])]

    q = pl.pallas_call(
        _critic_split_kernel,
        out_shape=jax.ShapeDtypeStruct((2, B, OUT_LANES), jnp.float32),
        grid=(2,),
        in_specs=in_specs,
        out_specs=pl.BlockSpec((None, B, OUT_LANES), lambda g: (g, 0, 0)),
        compiler_params=pltpu.CompilerParams(dimension_semantics=("parallel",)),
        cost_estimate=pl.CostEstimate(
            flops=flops, transcendentals=0, bytes_accessed=bytes_accessed),
    )(*args)
    return q[0, :, 0:1], q[1, :, 0:1]


# ---------------------------------------------------------------------------
# Reference & test harness
# ---------------------------------------------------------------------------
def init_params(key, state_dim, action_dim, hidden=256):
    """Deterministic synthetic init mirroring nn.Linear defaults (PyTorch layout)."""
    in_dim = state_dim + action_dim
    shapes = {
        "w1": (hidden, in_dim), "b1": (hidden,),
        "w2": (hidden, hidden), "b2": (hidden,),
        "w3": (1, hidden),      "b3": (1,),
        "w4": (hidden, in_dim), "b4": (hidden,),
        "w5": (hidden, hidden), "b5": (hidden,),
        "w6": (1, hidden),      "b6": (1,),
    }
    params = {}
    for name, shape in shapes.items():
        key, sub = jax.random.split(key)
        fan_in = shape[-1] if name.startswith("w") else shapes["w" + name[1:]][1]
        bound = 1.0 / jnp.sqrt(jnp.float32(fan_in))
        params[name] = jax.random.uniform(
            sub, shape, dtype=jnp.float32, minval=-bound, maxval=bound)
    return params


def critic_forward_ref(state, action, params):
    """Plain-JAX reference mirroring the PyTorch module exactly."""
    sa = jnp.concatenate([state, action], axis=1)

    def lin(x, w, b):
        return x @ w.T + b

    q1 = jax.nn.relu(lin(sa, params["w1"], params["b1"]))
    q1 = jax.nn.relu(lin(q1, params["w2"], params["b2"]))
    q1 = lin(q1, params["w3"], params["b3"])
    q2 = jax.nn.relu(lin(sa, params["w4"], params["b4"]))
    q2 = jax.nn.relu(lin(q2, params["w5"], params["b5"]))
    q2 = lin(q2, params["w6"], params["b6"])
    return q1, q2


if __name__ == "__main__":
    B, state_dim, action_dim, hidden = 8, 12, 4, 256

    key = jax.random.PRNGKey(0)
    kp, ks, ka = jax.random.split(key, 3)
    params = init_params(kp, state_dim, action_dim, hidden)
    state = jax.random.normal(ks, (B, state_dim), dtype=jnp.float32)
    action = jax.random.normal(ka, (B, action_dim), dtype=jnp.float32)

    q1_ref, q2_ref = critic_forward_ref(state, action, params)

    fwd_fused = jax.jit(functools.partial(critic_forward, split_branches=False))
    fwd_split = jax.jit(functools.partial(critic_forward, split_branches=True))

    # Default (bf16 weight storage): looser tolerance for weight quantization.
    prep_bf16 = prepare_params(params, hidden)
    for fwd in (fwd_fused, fwd_split):
        q1, q2 = fwd(state, action, prep_bf16)
        q1 = jax.block_until_ready(q1)
        q2 = jax.block_until_ready(q2)
        assert q1.shape == (B, 1) and q2.shape == (B, 1)
        assert jnp.allclose(q1, q1_ref, atol=5e-2, rtol=5e-2)
        assert jnp.allclose(q2, q2_ref, atol=5e-2, rtol=5e-2)

    # fp32 weight storage: tighter check.  (Default TPU matmul precision rounds
    # fp32 operands to bf16 inside the MXU on both the kernel and the XLA
    # reference, so exact fp32 equality is not expected.)
    prep_f32 = prepare_params(params, hidden, weight_dtype=jnp.float32)
    for fwd in (fwd_fused, fwd_split):
        q1, q2 = fwd(state, action, prep_f32)
        q1 = jax.block_until_ready(q1)
        q2 = jax.block_until_ready(q2)
        assert jnp.allclose(q1, q1_ref, atol=1e-2, rtol=1e-2)
        assert jnp.allclose(q2, q2_ref, atol=1e-2, rtol=1e-2)

    print("KERNEL_OK")
</pallas_src>

<mosaic_0001>
module attributes {stable_mosaic.version = 11 : i64} {
  func.func @_critic_fused_kernel(%arg0: memref<8x16xf32, #tpu.memory_space<vmem>>, %arg1: memref<16x512xbf16, #tpu.memory_space<vmem>>, %arg2: memref<1x512xf32, #tpu.memory_space<vmem>>, %arg3: memref<256x256xbf16, #tpu.memory_space<vmem>>, %arg4: memref<1x256xf32, #tpu.memory_space<vmem>>, %arg5: memref<256x256xbf16, #tpu.memory_space<vmem>>, %arg6: memref<1x256xf32, #tpu.memory_space<vmem>>, %arg7: memref<1x256xf32, #tpu.memory_space<vmem>>, %arg8: memref<1x256xf32, #tpu.memory_space<vmem>>, %arg9: memref<1x2xf32, #tpu.memory_space<vmem>>, %arg10: memref<8x128xf32, #tpu.memory_space<vmem>>) attributes {dimension_semantics = [], scalar_prefetch = 0 : i64, scratch_operands = 0 : i64, tpu.core_type = #tpu.core_type<tc>} {
    %c0 = arith.constant 0 : index
    %c0_0 = arith.constant 0 : index
    %0 = vector.load %arg0[%c0, %c0_0] : memref<8x16xf32, #tpu.memory_space<vmem>>, vector<8x16xf32>
    %1 = arith.truncf %0 : vector<8x16xf32> to vector<8x16xbf16>
    %c0_1 = arith.constant 0 : index
    %c0_2 = arith.constant 0 : index
    %2 = vector.load %arg1[%c0_1, %c0_2] : memref<16x512xbf16, #tpu.memory_space<vmem>>, vector<16x512xbf16>
    %cst = arith.constant dense<0.000000e+00> : vector<8x512xf32>
    %3 = tpu.matmul %1, %2, %cst {dimension_numbers = #tpu.dot_dimension_numbers<[1], [0], [0], [1], [0, 0, 1, 1], [], []>} : vector<8x16xbf16>, vector<16x512xbf16>, vector<8x512xf32> -> vector<8x512xf32>
    %c0_3 = arith.constant 0 : index
    %c0_4 = arith.constant 0 : index
    %4 = vector.load %arg2[%c0_3, %c0_4] : memref<1x512xf32, #tpu.memory_space<vmem>>, vector<1x512xf32>
    %5 = vector.broadcast %4 : vector<1x512xf32> to vector<8x512xf32>
    %6 = arith.addf %3, %5 : vector<8x512xf32>
    %cst_5 = arith.constant 0.000000e+00 : f32
    %7 = vector.broadcast %cst_5 : f32 to vector<8x512xf32>
    %8 = arith.maximumf %6, %7 : vector<8x512xf32>
    %9 = vector.extract_strided_slice %8 {offsets = [0, 0], sizes = [8, 256], strides = [1, 1]} : vector<8x512xf32> to vector<8x256xf32>
    %10 = vector.extract_strided_slice %8 {offsets = [0, 256], sizes = [8, 256], strides = [1, 1]} : vector<8x512xf32> to vector<8x256xf32>
    %11 = arith.truncf %9 : vector<8x256xf32> to vector<8x256xbf16>
    %c0_6 = arith.constant 0 : index
    %c0_7 = arith.constant 0 : index
    %12 = vector.load %arg3[%c0_6, %c0_7] : memref<256x256xbf16, #tpu.memory_space<vmem>>, vector<256x256xbf16>
    %cst_8 = arith.constant dense<0.000000e+00> : vector<8x256xf32>
    %13 = tpu.matmul %11, %12, %cst_8 {dimension_numbers = #tpu.dot_dimension_numbers<[1], [0], [0], [1], [0, 0, 1, 1], [], []>} : vector<8x256xbf16>, vector<256x256xbf16>, vector<8x256xf32> -> vector<8x256xf32>
    %c0_9 = arith.constant 0 : index
    %c0_10 = arith.constant 0 : index
    %14 = vector.load %arg4[%c0_9, %c0_10] : memref<1x256xf32, #tpu.memory_space<vmem>>, vector<1x256xf32>
    %15 = vector.broadcast %14 : vector<1x256xf32> to vector<8x256xf32>
    %16 = arith.addf %13, %15 : vector<8x256xf32>
    %cst_11 = arith.constant 0.000000e+00 : f32
    %17 = vector.broadcast %cst_11 : f32 to vector<8x256xf32>
    %18 = arith.maximumf %16, %17 : vector<8x256xf32>
    %19 = arith.truncf %10 : vector<8x256xf32> to vector<8x256xbf16>
    %c0_12 = arith.constant 0 : index
    %c0_13 = arith.constant 0 : index
    %20 = vector.load %arg5[%c0_12, %c0_13] : memref<256x256xbf16, #tpu.memory_space<vmem>>, vector<256x256xbf16>
    %cst_14 = arith.constant dense<0.000000e+00> : vector<8x256xf32>
    %21 = tpu.matmul %19, %20, %cst_14 {dimension_numbers = #tpu.dot_dimension_numbers<[1], [0], [0], [1], [0, 0, 1, 1], [], []>} : vector<8x256xbf16>, vector<256x256xbf16>, vector<8x256xf32> -> vector<8x256xf32>
    %c0_15 = arith.constant 0 : index
    %c0_16 = arith.constant 0 : index
    %22 = vector.load %arg6[%c0_15, %c0_16] : memref<1x256xf32, #tpu.memory_space<vmem>>, vector<1x256xf32>
    %23 = vector.broadcast %22 : vector<1x256xf32> to vector<8x256xf32>
    %24 = arith.addf %21, %23 : vector<8x256xf32>
    %cst_17 = arith.constant 0.000000e+00 : f32
    %25 = vector.broadcast %cst_17 : f32 to vector<8x256xf32>
    %26 = arith.maximumf %24, %25 : vector<8x256xf32>
    %c0_18 = arith.constant 0 : index
    %c0_19 = arith.constant 0 : index
    %27 = vector.load %arg7[%c0_18, %c0_19] : memref<1x256xf32, #tpu.memory_space<vmem>>, vector<1x256xf32>
    %28 = vector.broadcast %27 : vector<1x256xf32> to vector<8x256xf32>
    %29 = arith.mulf %18, %28 : vector<8x256xf32>
    %cst_20 = arith.constant dense<0.000000e+00> : vector<8xf32>
    %30 = vector.multi_reduction <add>, %29, %cst_20 [1] : vector<8x256xf32> to vector<8xf32>
    %31 = vector.shape_cast %30 : vector<8xf32> to vector<8x1xf32>
    %c0_21 = arith.constant 0 : index
    %c0_22 = arith.constant 0 : index
    %32 = vector.load %arg9[%c0_21, %c0_22] : memref<1x2xf32, #tpu.memory_space<vmem>>, vector<1x1xf32>
    %33 = vector.broadcast %32 : vector<1x1xf32> to vector<8x1xf32>
    %34 = arith.addf %31, %33 : vector<8x1xf32>
    %c0_23 = arith.constant 0 : index
    %c0_24 = arith.constant 0 : index
    %35 = vector.load %arg8[%c0_23, %c0_24] : memref<1x256xf32, #tpu.memory_space<vmem>>, vector<1x256xf32>
    %36 = vector.broadcast %35 : vector<1x256xf32> to vector<8x256xf32>
    %37 = arith.mulf %26, %36 : vector<8x256xf32>
    %cst_25 = arith.constant dense<0.000000e+00> : vector<8xf32>
    %38 = vector.multi_reduction <add>, %37, %cst_25 [1] : vector<8x256xf32> to vector<8xf32>
    %39 = vector.shape_cast %38 : vector<8xf32> to vector<8x1xf32>
    %c0_26 = arith.constant 0 : index
    %c1 = arith.constant 1 : index
    %40 = vector.load %arg9[%c0_26, %c1] : memref<1x2xf32, #tpu.memory_space<vmem>>, vector<1x1xf32>
    %41 = vector.broadcast %40 : vector<1x1xf32> to vector<8x1xf32>
    %42 = arith.addf %39, %41 : vector<8x1xf32>
    %43 = tpu.iota {dimensions = array<i32: 1>} : vector<8x128xi32>
    %c0_i32 = arith.constant 0 : i32
    %44 = vector.broadcast %c0_i32 : i32 to vector<8x128xi32>
    %45 = arith.cmpi eq, %43, %44 : vector<8x128xi32>
    %c1_i32 = arith.constant 1 : i32
    %46 = vector.broadcast %c1_i32 : i32 to vector<8x128xi32>
    %47 = arith.cmpi eq, %43, %46 : vector<8x128xi32>
    %cst_27 = arith.constant 0.000000e+00 : f32
    %48 = vector.shape_cast %42 : vector<8x1xf32> to vector<8x1xf32>
    %49 = vector.broadcast %48 : vector<8x1xf32> to vector<8x128xf32>
    %50 = vector.broadcast %cst_27 : f32 to vector<8x128xf32>
    %51 = arith.select %47, %49, %50 : vector<8x128xi1>, vector<8x128xf32>
    %52 = vector.shape_cast %34 : vector<8x1xf32> to vector<8x1xf32>
    %53 = vector.broadcast %52 : vector<8x1xf32> to vector<8x128xf32>
    %54 = arith.select %45, %53, %51 : vector<8x128xi1>, vector<8x128xf32>
    %c0_28 = arith.constant 0 : index
    %c0_29 = arith.constant 0 : index
    %55 = vector.load %arg10[%c0_28, %c0_29] : memref<8x128xf32, #tpu.memory_space<vmem>>, vector<8x128xf32>
    tpu.vector_store %arg10[%c0_28, %c0_29], %54 {strides = array<i32>} : memref<8x128xf32, #tpu.memory_space<vmem>>, vector<8x128xf32>,
    return
  }
}

</mosaic_0001>

<bundles_post_ra>
// kernel: critic_forward.1
= control target key start
LH: loop header
LB: loop body
LE: loop exit
PB: predicated region body
PF: predicated region fallthrough
CT: control target
= control target key end

     0   :  { %15 = vsyncpa [#allocation3], 0  ;;  %s1130_s0 = inlined_call_operand.vmem [shape: f32[8,16], index: 0, kind: input, shape index: {}]   ;;  %s1131_s1 = inlined_call_operand.vmem [shape: bf16[16,512], index: 1, kind: input, shape index: {}]   ;;  %s1132_s2 = inlined_call_operand.vmem [shape: f32[1,512], index: 2, kind: input, shape index: {}]   ;;  %s1133_s3 = inlined_call_operand.hbm [shape: bf16[256,256], index: 3, kind: input, shape index: {}]   ;;  %s1134_s4 = inlined_call_operand.vmem [shape: f32[1,256], index: 4, kind: input, shape index: {}]   ;;  %s1135_s5 = inlined_call_operand.hbm [shape: bf16[256,256], index: 5, kind: input, shape index: {}]   ;;  %s1136_s6 = inlined_call_operand.vmem [shape: f32[1,256], index: 6, kind: input, shape index: {}]   ;;  %s1137_s7 = inlined_call_operand.vmem [shape: f32[1,256], index: 7, kind: input, shape index: {}]   ;;  %s1138_s8 = inlined_call_operand.vmem [shape: f32[1,256], index: 8, kind: input, shape index: {}]   ;;  %s1139_s9 = inlined_call_operand.vmem [shape: f32[1,2], index: 9, kind: input, shape index: {}]   ;;  %s1140_s10 = inlined_call_operand.vmem [shape: f32[8,128], index: 10, kind: output, shape index: {}]  }
   0x1   :  { %16 = vsyncpa [#allocation5], 0  ;;  %s996_s13 = smov [#allocation2]   ;;  %s948_s17 = scalar_lea.hbm %s1133_s3, 4096 }
   0x2   :  { %s28_s14 = sshll.u32 %s996_s13, 4  ;;  %p949_p0 = scmp.ne.s32.totalorder %s1133_s3, %s948_s17  ;;  %s29_s14 = int_to_ptr.vmem [resolvable:$true] %s28_s14 }
   0x3   :  { %p952_p1 = scmp.lt.u32.totalorder %s948_s17, %s1133_s3 }
   0x5   :  { %p954_p2 = pnand %p952_p1, %p949_p0 }
   0x7   :  { %957 = shalt.err (!%p954_p2)
}
   0x8   :  { %s958_s22 = scalar_lea.vmem %s29_s14, 4096  ;;  %p963_p4 = scmp.lt.s32.totalorder %s29_s14, %s29_s14 }
   0x9   :  { %p959_p3 = scmp.ne.s32.totalorder %s29_s14, %s958_s22  ;;  %p964_p5 = scmp.lt.s32.totalorder %s958_s22, %s958_s22 }
   0xb   :  { %p965_p6 = por %p964_p5, %p963_p4 }
   0xd   :  { %p966_p7 = pnand %p965_p6, %p959_p3 }
   0xf   :  { %969 = shalt.err (!%p966_p7)
}
  0x10   :  { %s997_s23 = smov 128   ;;  %s998_s24 = smov 8  }
  0x11   :  { %34 = dma.hbm_to_vmem [thread:$0]  %s1133_s3, 4096, %s29_s14, [#allocation3], %s997_s23, %s997_s23, %s998_s24  }
  0x12   :  { %s999_s27 = smov [#allocation4]   ;;  %s970_s11 = scalar_lea.hbm %s1135_s5, 4096 }
  0x13   :  { %s42_s28 = sshll.u32 %s999_s27, 4  ;;  %p971_p8 = scmp.ne.s32.totalorder %s1135_s5, %s970_s11  ;;  %s43_s28 = int_to_ptr.vmem [resolvable:$true] %s42_s28 }
  0x14   :  { %p974_p9 = scmp.lt.u32.totalorder %s970_s11, %s1135_s5 }
  0x16   :  { %p976_p10 = pnand %p974_p9, %p971_p8 }
  0x18   :  { %979 = shalt.err (!%p976_p10)
}
  0x19   :  { %s980_s17 = scalar_lea.vmem %s43_s28, 4096  ;;  %p985_p12 = scmp.lt.s32.totalorder %s43_s28, %s43_s28 }
  0x1a   :  { %p981_p11 = scmp.ne.s32.totalorder %s43_s28, %s980_s17  ;;  %p986_p13 = scmp.lt.s32.totalorder %s980_s17, %s980_s17 }
  0x1c   :  { %p987_p0 = por %p986_p13, %p985_p12 }
  0x1e   :  { %p988_p1 = pnand %p987_p0, %p981_p11 }
  0x20   :  { %991 = shalt.err (!%p988_p1)
}
  0x21   :  { %48 = dma.hbm_to_vmem [thread:$0]  %s1135_s5, 4096, %s43_s28, [#allocation5], %s997_s23, %s997_s23, %s998_s24  }
  0x22   :  { %992 = dma.done.wait [#allocation3], 4096  }
  0x23   :  { %993 = vsyncadd [#allocation3], 4294963200 }
  0x24   :  { %994 = dma.done.wait [#allocation5], 4096  }
  0x25   :  { %995 = vsyncadd [#allocation5], 4294963200  ;;  %v1000_v0 = vmov 0   ;;  %v846_v1 = vld [vmem:[%s1131_s1 + $0x4] ss:$16 sps:$4 sm:$0xff]   ;;  %vm112_vm0 = vcmask 130048  }
  0x26   :  { %148 = vmatprep.mubr.bf16.mxu0 %v1000_v0  ;;  %189 = vmatprep.mubr.bf16.mxu1 %v1000_v0  ;;  %v848_v2 = vld [vmem:[%s1131_s1 + $0xc] ss:$16 sps:$4 sm:$0xff]   ;;  %v850_v3 = vld [vmem:[%s1131_s1] ss:$16 sps:$4 sm:$0xff]   ;;  %v851_v4 = vld [vmem:[%s1131_s1 + $0x8] ss:$16 sps:$4 sm:$0xff]  }
  0x27   :  { %845 = vset.pattern.permute.xlu0 %v1000_v0  ;;  %116 = vmatprep.subr.bf16.mxu0 %v846_v1  ;;  %v64_v5 = vld [vmem:[%s1130_s0] sm:$0xff]  ;;  %v860_v11 = vld [vmem:[#allocation2 + $0x14] ss:$8 sps:$4 sm:$0xff]   ;;  %v858_v12 = vld [vmem:[#allocation2 + $0x10] ss:$8 sps:$4 sm:$0xff]  }
  0x28   :  { %157 = vmatprep.subr.bf16.mxu1 %v848_v2  ;;  %v65_v6 = vpack.c.bf16 %v64_v5, %v64_v5  ;;  %v852_v7 = vld [vmem:[#allocation2] ss:$8 sps:$4 sm:$0xff]   ;;  %117 = vmatpush1.bf16.msra.mxu0 %v850_v3  ;;  %v854_v8 = vld [vmem:[#allocation2 + $0x4] ss:$8 sps:$4 sm:$0xff]   ;;  %v863_v13 = vld [vmem:[#allocation4 + $0x14] ss:$8 sps:$4 sm:$0xff]  }
  0x29   :  { %158 = vmatpush1.bf16.msra.mxu1 %v851_v4  ;;  %v855_v9 = vld [vmem:[#allocation4] ss:$8 sps:$4 sm:$0xff]   ;;  %v857_v10 = vld [vmem:[#allocation4 + $0x4] ss:$8 sps:$4 sm:$0xff]   ;;  %408 = vmatprep.subr.bf16.mxu0 %v854_v8  ;;  %v861_v14 = vld [vmem:[#allocation4 + $0x10] ss:$8 sps:$4 sm:$0xff]   ;;  %v72_v8 = vlaneseq }
  0x2a   :  { %657 = vmatprep.subr.bf16.mxu1 %v857_v10  ;;  %v866_v15 = vld [vmem:[#allocation2 + $0x24] ss:$8 sps:$4 sm:$0xff]   ;;  %v864_v17 = vld [vmem:[#allocation2 + $0x20] ss:$8 sps:$4 sm:$0xff]   ;;  %v872_v19 = vld [vmem:[#allocation2 + $0x34] ss:$8 sps:$4 sm:$0xff]  }
  0x2b   :  { %770 = vmatmul.mubr.msk.bf16.vlgmr.msra.gmra.mrb[0].mxu0 %vm112_vm0, %v65_v6  ;;  %v869_v16 = vld [vmem:[#allocation4 + $0x24] ss:$8 sps:$4 sm:$0xff]   ;;  %v867_v18 = vld [vmem:[#allocation4 + $0x20] ss:$8 sps:$4 sm:$0xff]   ;;  %v875_v20 = vld [vmem:[#allocation4 + $0x34] ss:$8 sps:$4 sm:$0xff]  }
  0x2c   :  { %771 = vmatmul.mubr.msk.bf16.vlgmr.msra.gmra.mrb[0].mxu1 %vm112_vm0, %v65_v6  ;;  %409 = vmatpush1.bf16.msra.mxu0 %v852_v7  ;;  %v870_v21 = vld [vmem:[#allocation2 + $0x30] ss:$8 sps:$4 sm:$0xff]   ;;  %v878_v23 = vld [vmem:[#allocation2 + $0x44] ss:$8 sps:$4 sm:$0xff]   ;;  %v876_v25 = vld [vmem:[#allocation2 + $0x40] ss:$8 sps:$4 sm:$0xff]  }
  0x2d   :  { %658 = vmatpush1.bf16.msra.mxu1 %v855_v9  ;;  %410 = vmatprep.subr.bf16.mxu0 %v860_v11  ;;  %v873_v22 = vld [vmem:[#allocation4 + $0x30] ss:$8 sps:$4 sm:$0xff]   ;;  %v881_v24 = vld [vmem:[#allocation4 + $0x44] ss:$8 sps:$4 sm:$0xff]   ;;  %v879_v26 = vld [vmem:[#allocation4 + $0x40] ss:$8 sps:$4 sm:$0xff]  }
  0x2e   :  { %659 = vmatprep.subr.bf16.mxu1 %v863_v13  ;;  %v884_v27 = vld [vmem:[#allocation2 + $0x54] ss:$8 sps:$4 sm:$0xff]   ;;  %v882_v29 = vld [vmem:[#allocation2 + $0x50] ss:$8 sps:$4 sm:$0xff]   ;;  %v890_v31 = vld [vmem:[#allocation2 + $0x64] ss:$8 sps:$4 sm:$0xff]  }
  0x2f   :  { %v887_v28 = vld [vmem:[#allocation4 + $0x54] ss:$8 sps:$4 sm:$0xff]   ;;  %v885_v30 = vld [vmem:[#allocation4 + $0x50] ss:$8 sps:$4 sm:$0xff]   ;;  %v893_v32 = vld [vmem:[#allocation4 + $0x64] ss:$8 sps:$4 sm:$0xff]  }
  0x30   :  { %411 = vmatpush1.bf16.msra.mxu0 %v858_v12  ;;  %v888_v33 = vld [vmem:[#allocation2 + $0x60] ss:$8 sps:$4 sm:$0xff]   ;;  %v896_v35 = vld [vmem:[#allocation2 + $0x74] ss:$8 sps:$4 sm:$0xff]   ;;  %v894_v37 = vld [vmem:[#allocation2 + $0x70] ss:$8 sps:$4 sm:$0xff]  }
  0x31   :  { %660 = vmatpush1.bf16.msra.mxu1 %v861_v14  ;;  %412 = vmatprep.subr.bf16.mxu0 %v866_v15  ;;  %v891_v34 = vld [vmem:[#allocation4 + $0x60] ss:$8 sps:$4 sm:$0xff]   ;;  %v899_v36 = vld [vmem:[#allocation4 + $0x74] ss:$8 sps:$4 sm:$0xff]   ;;  %v897_v38 = vld [vmem:[#allocation4 + $0x70] ss:$8 sps:$4 sm:$0xff]  }
  0x32   :  { %661 = vmatprep.subr.bf16.mxu1 %v869_v16  ;;  %v902_v39 = vld [vmem:[#allocation2 + $0x84] ss:$8 sps:$4 sm:$0xff]   ;;  %v900_v41 = vld [vmem:[#allocation2 + $0x80] ss:$8 sps:$4 sm:$0xff]   ;;  %v908_v43 = vld [vmem:[#allocation2 + $0x94] ss:$8 sps:$4 sm:$0xff]  }
  0x33   :  { %v905_v40 = vld [vmem:[#allocation4 + $0x84] ss:$8 sps:$4 sm:$0xff]   ;;  %v903_v42 = vld [vmem:[#allocation4 + $0x80] ss:$8 sps:$4 sm:$0xff]   ;;  %v906_v44 = vld [vmem:[#allocation2 + $0x90] ss:$8 sps:$4 sm:$0xff]  }
  0x34   :  { %413 = vmatpush1.bf16.msra.mxu0 %v864_v17  ;;  %v911_v45 = vld [vmem:[#allocation4 + $0x94] ss:$8 sps:$4 sm:$0xff]   ;;  %v909_v46 = vld [vmem:[#allocation4 + $0x90] ss:$8 sps:$4 sm:$0xff]   ;;  %v914_v47 = vld [vmem:[#allocation2 + $0xa4] ss:$8 sps:$4 sm:$0xff]  }
  0x35   :  { %662 = vmatpush1.bf16.msra.mxu1 %v867_v18  ;;  %414 = vmatprep.subr.bf16.mxu0 %v872_v19  ;;  %v917_v48 = vld [vmem:[#allocation4 + $0xa4] ss:$8 sps:$4 sm:$0xff]   ;;  %v912_v49 = vld [vmem:[#allocation2 + $0xa0] ss:$8 sps:$4 sm:$0xff]   ;;  %v920_v51 = vld [vmem:[#allocation2 + $0xb4] ss:$8 sps:$4 sm:$0xff]  }
  0x36   :  { %663 = vmatprep.subr.bf16.mxu1 %v875_v20  ;;  %v915_v50 = vld [vmem:[#allocation4 + $0xa0] ss:$8 sps:$4 sm:$0xff]   ;;  %v923_v52 = vld [vmem:[#allocation4 + $0xb4] ss:$8 sps:$4 sm:$0xff]   ;;  %v918_v53 = vld [vmem:[#allocation2 + $0xb0] ss:$8 sps:$4 sm:$0xff]  }
  0x37   :  { %v921_v54 = vld [vmem:[#allocation4 + $0xb0] ss:$8 sps:$4 sm:$0xff]   ;;  %v926_v55 = vld [vmem:[#allocation2 + $0xc4] ss:$8 sps:$4 sm:$0xff]   ;;  %v924_v57 = vld [vmem:[#allocation2 + $0xc0] ss:$8 sps:$4 sm:$0xff]  }
  0x38   :  { %415 = vmatpush1.bf16.msra.mxu0 %v870_v21  ;;  %v929_v56 = vld [vmem:[#allocation4 + $0xc4] ss:$8 sps:$4 sm:$0xff]   ;;  %v927_v58 = vld [vmem:[#allocation4 + $0xc0] ss:$8 sps:$4 sm:$0xff]   ;;  %v932_v59 = vld [vmem:[#allocation2 + $0xd4] ss:$8 sps:$4 sm:$0xff]  }
  0x39   :  { %664 = vmatpush1.bf16.msra.mxu1 %v873_v22  ;;  %416 = vmatprep.subr.bf16.mxu0 %v878_v23  ;;  %v935_v60 = vld [vmem:[#allocation4 + $0xd4] ss:$8 sps:$4 sm:$0xff]   ;;  %v930_v61 = vld [vmem:[#allocation2 + $0xd0] ss:$8 sps:$4 sm:$0xff]   ;;  %v938_v63 = vld [vmem:[#allocation2 + $0xe4] ss:$8 sps:$4 sm:$0xff]  }
  0x3a   :  { %665 = vmatprep.subr.bf16.mxu1 %v881_v24  ;;  %v933_v62 = vld [vmem:[#allocation4 + $0xd0] ss:$8 sps:$4 sm:$0xff]   ;;  %v941_v1 = vld [vmem:[#allocation4 + $0xe4] ss:$8 sps:$4 sm:$0xff]   ;;  %v936_v2 = vld [vmem:[#allocation2 + $0xe0] ss:$8 sps:$4 sm:$0xff]  }
  0x3b   :  { %v939_v3 = vld [vmem:[#allocation4 + $0xe0] ss:$8 sps:$4 sm:$0xff]   ;;  %v944_v4 = vld [vmem:[#allocation2 + $0xf4] ss:$8 sps:$4 sm:$0xff]   ;;  %v942_v6 = vld [vmem:[#allocation2 + $0xf0] ss:$8 sps:$4 sm:$0xff]  }
  0x3c   :  { %417 = vmatpush1.bf16.msra.mxu0 %v876_v25  ;;  %v947_v5 = vld [vmem:[#allocation4 + $0xf4] ss:$8 sps:$4 sm:$0xff]   ;;  %v945_v7 = vld [vmem:[#allocation4 + $0xf0] ss:$8 sps:$4 sm:$0xff]   ;;  %v73_v9 = vshrl.u32 %v72_v8, 7 }
  0x3d   :  { %666 = vmatpush1.bf16.msra.mxu1 %v879_v26  ;;  %418 = vmatprep.subr.bf16.mxu0 %v884_v27  ;;  %v70_v12 = vld [vmem:[%s1132_s2] sm:$0xf] }
  0x3e   :  { %667 = vmatprep.subr.bf16.mxu1 %v887_v28  ;;  %v1100_v10 = vsub.s32 0, %v73_v9  ;;  %v82_v11 = vsub.s32 2, %v73_v9  ;;  %v78_v13 = vsub.s32 1, %v73_v9  ;;  %v86_v14 = vsub.s32 3, %v73_v9 }
  0x40   :  { %419 = vmatpush1.bf16.msra.mxu0 %v882_v29  ;;  %v75_v15 = vrot.slane %v70_v12, %v1100_v10  ;;  %v83_v16 = vrot.slane %v70_v12, %v82_v11  ;;  %v79_v17 = vrot.slane %v70_v12, %v78_v13  ;;  %v87_v18 = vrot.slane %v70_v12, %v86_v14  ;;  %v836_v12 = vld [vmem:[%s1139_s9] ss:$0 sm:$0xff] }
  0x41   :  { %668 = vmatpush1.bf16.msra.mxu1 %v885_v30  ;;  %420 = vmatprep.subr.bf16.mxu0 %v890_v31 }
  0x42   :  { %669 = vmatprep.subr.bf16.mxu1 %v893_v32 }
  0x44   :  { %421 = vmatpush1.bf16.msra.mxu0 %v888_v33 }
  0x45   :  { %670 = vmatpush1.bf16.msra.mxu1 %v891_v34  ;;  %422 = vmatprep.subr.bf16.mxu0 %v896_v35 }
  0x46   :  { %671 = vmatprep.subr.bf16.mxu1 %v899_v36 }
  0x48   :  { %423 = vmatpush1.bf16.msra.mxu0 %v894_v37 }
  0x49   :  { %672 = vmatpush1.bf16.msra.mxu1 %v897_v38  ;;  %424 = vmatprep.subr.bf16.mxu0 %v902_v39  ;;  %v236_v39 = vld [vmem:[%s1134_s4] sm:$0x3] }
  0x4a   :  { %673 = vmatprep.subr.bf16.mxu1 %v905_v40  ;;  %v485_v40 = vld [vmem:[%s1136_s6] sm:$0x3] }
  0x4c   :  { %425 = vmatpush1.bf16.msra.mxu0 %v900_v41  ;;  %v241_v41 = vrot.slane %v236_v39, %v1100_v10 }
  0x4d   :  { %674 = vmatpush1.bf16.msra.mxu1 %v903_v42  ;;  %426 = vmatprep.subr.bf16.mxu0 %v908_v43  ;;  %v490_v42 = vrot.slane %v485_v40, %v1100_v10  ;;  %v700_v43 = vld [vmem:[%s1137_s7] sm:$0x3] }
  0x4e   :  { %675 = vmatprep.subr.bf16.mxu1 %v911_v45  ;;  %v494_v45 = vrot.slane %v485_v40, %v78_v13 }
  0x50   :  { %427 = vmatpush1.bf16.msra.mxu0 %v906_v44  ;;  %v245_v44 = vrot.slane %v236_v39, %v78_v13 }
  0x51   :  { %676 = vmatpush1.bf16.msra.mxu1 %v909_v46  ;;  %428 = vmatprep.subr.bf16.mxu0 %v914_v47  ;;  %v725_v46 = vld [vmem:[%s1138_s8] sm:$0x3] }
  0x52   :  { %677 = vmatprep.subr.bf16.mxu1 %v917_v48 }
  0x54   :  { %429 = vmatpush1.bf16.msra.mxu0 %v912_v49 }
  0x55   :  { %678 = vmatpush1.bf16.msra.mxu1 %v915_v50  ;;  %430 = vmatprep.subr.bf16.mxu0 %v920_v51  ;;  %v705_v50 = vrot.slane %v700_v43, %v1100_v10 }
  0x56   :  { %679 = vmatprep.subr.bf16.mxu1 %v923_v52 }
  0x58   :  { %431 = vmatpush1.bf16.msra.mxu0 %v918_v53 }
  0x59   :  { %680 = vmatpush1.bf16.msra.mxu1 %v921_v54  ;;  %432 = vmatprep.subr.bf16.mxu0 %v926_v55  ;;  %v730_v54 = vrot.slane %v725_v46, %v1100_v10  ;;  %v1001_v10 = vmov 1  }
  0x5a   :  { %681 = vmatprep.subr.bf16.mxu1 %v929_v56  ;;  %v709_v56 = vrot.slane %v700_v43, %v78_v13  ;;  %843 = vset.pattern.permute.xlu1 %v1001_v10 }
  0x5c   :  { %433 = vmatpush1.bf16.msra.mxu0 %v924_v57 }
  0x5d   :  { %682 = vmatpush1.bf16.msra.mxu1 %v927_v58  ;;  %434 = vmatprep.subr.bf16.mxu0 %v932_v59 }
  0x5e   :  { %683 = vmatprep.subr.bf16.mxu1 %v935_v60  ;;  %v734_v60 = vrot.slane %v725_v46, %v78_v13 }
  0x60   :  { %435 = vmatpush1.bf16.msra.mxu0 %v930_v61 }
  0x61   :  { %684 = vmatpush1.bf16.msra.mxu1 %v933_v62  ;;  %436 = vmatprep.subr.bf16.mxu0 %v938_v63 }
  0x62   :  { %685 = vmatprep.subr.bf16.mxu1 %v941_v1 }
  0x64   :  { %437 = vmatpush1.bf16.msra.mxu0 %v936_v2 }
  0x65   :  { %686 = vmatpush1.bf16.msra.mxu1 %v939_v3  ;;  %438 = vmatprep.subr.bf16.mxu0 %v944_v4 }
  0x66   :  { %687 = vmatprep.subr.bf16.mxu1 %v947_v5 }
  0x68   :  { %439 = vmatpush1.bf16.msra.mxu0 %v942_v6 }
  0x69   :  { %688 = vmatpush1.bf16.msra.mxu1 %v945_v7 }
  0xfe   :  { %v150_v19 = vpop.f32.mrb[0].mxu0 }
  0xff   :  { %v191_v20 = vpop.f32.mrb[0].mxu1  ;;  %v151_v21 = vadd.f32 %v150_v19, %v75_v15  ;;  %v152_v23 = vpop.f32.mrb[1].mxu0 }
 0x100   :  { %v192_v22 = vadd.f32 %v191_v20, %v83_v16  ;;  %v193_v24 = vpop.f32.mrb[1].mxu1  ;;  %v153_v25 = vadd.f32 %v152_v23, %v79_v17  ;;  %v154_v28 = vpop.f32.mrb[2].mxu0  ;;  %v744_v17 = vand.u32 127, %v72_v8 }
 0x101   :  { %v194_v26 = vadd.f32 %v193_v24, %v87_v18  ;;  %v195_v27 = vpop.f32.mrb[2].mxu1  ;;  %v198_v29 = vmax.f32 %v151_v21, 0.0  ;;  %v155_v32 = vpop.f32.mrb[3].mxu0 }
 0x102   :  { %v200_v30 = vmax.f32 %v192_v22, 0.0  ;;  %v196_v31 = vpop.f32.mrb[3].mxu1  ;;  %v199_v33 = vmax.f32 %v153_v25, 0.0  ;;  %vm746_vm1 = vcmp.eq.s32.totalorder %v744_v17, 1  ;;  %vm745_vm2 = vcmp.eq.s32.totalorder %v744_v17, 0 }
 0x103   :  { %v201_v34 = vmax.f32 %v194_v26, 0.0  ;;  %v202_v35 = vpack.c.bf16 %v198_v29, %v198_v29 }
 0x104   :  { %v203_v36 = vpack.c.bf16 %v199_v33, %v199_v33  ;;  %v451_v38 = vpack.c.bf16 %v200_v30, %v200_v30 }
 0x105   :  { %v452_v37 = vpack.c.bf16 %v201_v34, %v201_v34 }
 0x106   :  { %440 = vmatprep.mubr.bf16.mxu0 %v203_v36 }
 0x107   :  { %689 = vmatprep.mubr.bf16.mxu1 %v452_v37  ;;  %441 = vmatmul.mubr.bf16.vlgmr.msra.gmra.mrb[4].mxu0 %v202_v35 }
 0x108   :  { %690 = vmatmul.mubr.bf16.vlgmr.msra.gmra.mrb[4].mxu1 %v451_v38 }
 0x1da   :  { %v442_v47 = vpop.f32.mrb[4].mxu0 }
 0x1db   :  { %v691_v48 = vpop.f32.mrb[4].mxu1  ;;  %v443_v49 = vadd.f32 %v442_v47, %v241_v41  ;;  %v444_v52 = vpop.f32.mrb[5].mxu0 }
 0x1dc   :  { %v692_v51 = vadd.f32 %v691_v48, %v490_v42  ;;  %v693_v53 = vpop.f32.mrb[5].mxu1  ;;  %v445_v55 = vadd.f32 %v444_v52, %v245_v44  ;;  %v446_v58 = vpop.f32.mrb[6].mxu0 }
 0x1dd   :  { %v694_v57 = vadd.f32 %v693_v53, %v494_v45  ;;  %v695_v59 = vpop.f32.mrb[6].mxu1  ;;  %v449_v61 = vmax.f32 %v443_v49, 0.0  ;;  %v447_v63 = vpop.f32.mrb[7].mxu0 }
 0x1de   :  { %v698_v62 = vmax.f32 %v692_v51, 0.0  ;;  %v696_v1 = vpop.f32.mrb[7].mxu1  ;;  %v450_v2 = vmax.f32 %v445_v55, 0.0 }
 0x1df   :  { %v699_v3 = vmax.f32 %v694_v57, 0.0  ;;  %v712_v4 = vmul.f32 %v705_v50, %v449_v61 }
 0x1e0   :  { %v737_v5 = vmul.f32 %v730_v54, %v698_v62  ;;  %v713_v6 = vmul.f32 %v709_v56, %v450_v2 }
 0x1e1   :  { %v738_v7 = vmul.f32 %v734_v60, %v699_v3 }
 0x1e2   :  { %v714_v11 = vadd.f32 %v713_v6, %v712_v4 }
 0x1e3   :  { %v739_v9 = vadd.f32 %v738_v7, %v737_v5 }
 0x1e5   :  { %740 = vadd.xlane.f32.xlu0 %v739_v9 }
 0x1e9   :  { %715 = vadd.xlane.f32.xlu0 %v714_v11 }
 0x272   :  { %v741_v13 = vpop.xlane.xlu0 %740 }
 0x273   :  { %v742_v14 = vadd.f32 %v836_v12, %v741_v13 }
 0x275   :  { %749 = vperm.xlu1 %843, %v742_v14  }
 0x276   :  { %v716_v15 = vpop.xlane.xlu0 %715 }
 0x277   :  { %v724_v16 = vadd.f32 %v836_v12, %v716_v15 }
 0x279   :  { %844 = vset.pattern.permute.xlu1 %v1000_v0 }
 0x27a   :  { %755 = vperm.xlu1 %844, %v724_v16  }
 0x2f4   :  { %v750_v18 = vpop.permute.xlu1 %749 }
 0x2f5   :  { %v752_v19 = vsel %vm746_vm1, %v750_v18, 0.0 }
 0x2f9   :  { %v756_v20 = vpop.permute.xlu1 %755 }
 0x2fa   :  { %v758_v21 = vsel %vm745_vm2, %v756_v20, %v752_v19 }
 0x2fb   :  { %759 = vst [vmem:[%s1140_s10] sm:$0xff] %v758_v21 }
 0x2fc   :  { %764 = vsyncpa [#allocation3], 1 }
 0x2fd   :  { %765 = vsyncpa [#allocation5], 1 }

</bundles_post_ra>
